<compile_context>
chip_gen: v6e
topology: v6e:2x2x1
jax: 0.10.0
libtpu: 0.0.40
codegen_flags: <defaults>
</compile_context>

<pallas_src>
import jax
import jax.numpy as jnp
from jax.experimental import pallas as pl
from jax.experimental.pallas import tpu as pltpu


def nn_kernel(x_ref, w_ref, b_ref, o_ref):
    # x_ref: (4, TB) VMEM (features x batch-tile)
    # w_ref: (3, 4)  SMEM (fused weight), b_ref: (3,) SMEM (fused bias)
    # o_ref: (3, TB) VMEM (classes x batch-tile)
    x = x_ref[...]  # (4, TB) f32

    # Fused linear as 12 scalar-broadcast FMAs on the VPU (lane-dense).
    logits = []
    for c in range(3):
        acc = x[0:1, :] * w_ref[c, 0]
        for f in range(1, 4):
            acc = acc + x[f:f + 1, :] * w_ref[c, f]
        logits.append(acc + b_ref[c])  # (1, TB)

    # Numerically stable softmax over the 3 classes (elementwise across lanes).
    m = jnp.maximum(jnp.maximum(logits[0], logits[1]), logits[2])
    e = [jnp.exp(l - m) for l in logits]
    # Exact reciprocal: the kernel is DMA-bound, so the precise divide is free
    # and rows sum to 1 to fp32 precision (approx=True broke the unit-sum check).
    inv = pl.reciprocal(e[0] + e[1] + e[2], approx=False)
    for c in range(3):
        o_ref[c:c + 1, :] = e[c] * inv  # direct per-row store, no concatenate


def nn_forward_T(xT, w1, b1, w2, b2, *, tb=128 * 1024):
    """Feature-major forward. xT: (4, B) float32. Returns (3, B) float32.

    Params in PyTorch layout: w1 (7, 4), b1 (7,), w2 (3, 7), b2 (3,).
    """
    xT = jnp.asarray(xT, jnp.float32)
    w1 = jnp.asarray(w1, jnp.float32)
    b1 = jnp.asarray(b1, jnp.float32)
    w2 = jnp.asarray(w2, jnp.float32)
    b2 = jnp.asarray(b2, jnp.float32)
    B = int(xT.shape[1])

    # Algebraic fusion of the two Linear layers (no nonlinearity between them):
    #   logits = (x @ w1.T + b1) @ w2.T + b2 = x @ (w2 @ w1).T + (w2 @ b1 + b2)
    wf = w2 @ w1        # (3, 4)
    bf = w2 @ b1 + b2   # (3,)

    tb = int(tb)
    if B <= tb:
        # Single full-extent block: no (8,128) divisibility requirement since
        # the block equals the full array shape.
        tb_eff = B
        n_blk = 1
    else:
        # tb is a multiple of 1024 (hence of 128); the final block may be
        # partial and Pallas masks it -- the tail lanes are never read back.
        # (On v7x this also guarantees n_blk >= 2 so both TensorCores get work.)
        tb_eff = tb
        n_blk = pl.cdiv(B, tb_eff)

    outT = pl.pallas_call(
        nn_kernel,
        out_shape=jax.ShapeDtypeStruct((3, B), jnp.float32),
        grid=(n_blk,),
        in_specs=[
            pl.BlockSpec((4, tb_eff), lambda i: (0, i)),            # x^T tile
            pl.BlockSpec(memory_space=pltpu.MemorySpace.SMEM),      # fused W (3,4)
            pl.BlockSpec(memory_space=pltpu.MemorySpace.SMEM),      # fused b (3,)
        ],
        out_specs=pl.BlockSpec((3, tb_eff), lambda i: (0, i)),
        compiler_params=pltpu.CompilerParams(
            dimension_semantics=("parallel",),
            # Large double-buffered tiles (sublane-padded to 8 rows) need more
            # than v5e's 16 MiB default scoped VMEM; stay under v7x's 64 MiB.
            vmem_limit_bytes=48 * 1024 * 1024,
        ),
        cost_estimate=pl.CostEstimate(
            flops=15 * B, transcendentals=3 * B, bytes_accessed=28 * B),
    )(xT, wf, bf)
    return outT


def nn_forward(x, w1, b1, w2, b2, *, tb=128 * 1024):
    """Batch-major convenience wrapper. x: (B, 4). Returns (B, 3).

    The two transposes here are pure layout plumbing; prefer nn_forward_T in a
    larger pipeline so they fuse with neighbouring ops.
    """
    x = jnp.asarray(x, jnp.float32)
    return nn_forward_T(x.T, w1, b1, w2, b2, tb=tb).T


def init_params(key):
    """Deterministic init mimicking PyTorch nn.Linear default (U[-1/sqrt(fan_in), +])."""
    k1, k2, k3, k4 = jax.random.split(key, 4)
    bound1 = 1.0 / jnp.sqrt(4.0)
    bound2 = 1.0 / jnp.sqrt(7.0)
    w1 = jax.random.uniform(k1, (7, 4), jnp.float32, -bound1, bound1)
    b1 = jax.random.uniform(k2, (7,), jnp.float32, -bound1, bound1)
    w2 = jax.random.uniform(k3, (3, 7), jnp.float32, -bound2, bound2)
    b2 = jax.random.uniform(k4, (3,), jnp.float32, -bound2, bound2)
    return w1, b1, w2, b2


def _reference(x, w1, b1, w2, b2):
    h = x @ w1.T + b1
    logits = h @ w2.T + b2
    return jax.nn.softmax(logits, axis=-1)


if __name__ == "__main__":
    key = jax.random.PRNGKey(0)
    kx, kp, kx2 = jax.random.split(key, 3)
    w1, b1, w2, b2 = init_params(kp)

    # Small-batch check (single full-extent block path).
    B = 8
    x = jax.random.normal(kx, (B, 4), jnp.float32)
    out = jax.block_until_ready(nn_forward(x, w1, b1, w2, b2))
    ref = _reference(x, w1, b1, w2, b2)
    assert out.shape == (B, 3)
    assert jnp.allclose(out, ref, atol=1e-5), "mismatch vs reference (small batch)"
    assert jnp.allclose(jnp.sum(out, axis=-1), 1.0, atol=1e-5), "rows do not sum to 1"

    # Multi-block check with a partial final tile (grid path), tiny tile on purpose.
    B2 = 300
    x2 = jax.random.normal(kx2, (B2, 4), jnp.float32)
    out2 = jax.block_until_ready(nn_forward(x2, w1, b1, w2, b2, tb=128))
    ref2 = _reference(x2, w1, b1, w2, b2)
    assert out2.shape == (B2, 3)
    assert jnp.allclose(out2, ref2, atol=1e-5), "mismatch vs reference (tiled batch)"
    assert jnp.allclose(jnp.sum(out2, axis=-1), 1.0, atol=1e-5), "rows do not sum to 1"

    print("KERNEL_OK")
</pallas_src>

<mosaic_0001>
module attributes {stable_mosaic.version = 11 : i64} {
  func.func @nn_kernel(%arg0: i32, %arg1: memref<4x8xf32, #tpu.memory_space<vmem>>, %arg2: memref<3x4xf32, #tpu.memory_space<smem>>, %arg3: memref<3xf32, #tpu.memory_space<smem>>, %arg4: memref<3x8xf32, #tpu.memory_space<vmem>>) attributes {dimension_semantics = [#tpu.dimension_semantics<parallel>], iteration_bounds = array<i64: 1>, scalar_prefetch = 0 : i64, scratch_operands = 0 : i64, tpu.core_type = #tpu.core_type<tc>, window_params = [{transform_indices = @transform_0, window_bounds = array<i64: 4, 8>}, {transform_indices = @transform_1, window_bounds = array<i64: 3, 4>}, {transform_indices = @transform_2, window_bounds = array<i64: 3>}, {transform_indices = @transform_3, window_bounds = array<i64: 3, 8>}]} {
    %c0 = arith.constant 0 : index
    %c0_0 = arith.constant 0 : index
    %0 = vector.load %arg1[%c0, %c0_0] : memref<4x8xf32, #tpu.memory_space<vmem>>, vector<4x8xf32>
    %1 = vector.extract_strided_slice %0 {offsets = [0, 0], sizes = [1, 8], strides = [1, 1]} : vector<4x8xf32> to vector<1x8xf32>
    %c0_1 = arith.constant 0 : index
    %c0_2 = arith.constant 0 : index
    %2 = memref.load %arg2[%c0_1, %c0_2] : memref<3x4xf32, #tpu.memory_space<smem>>
    %3 = vector.broadcast %2 : f32 to vector<1x8xf32>
    %4 = arith.mulf %1, %3 : vector<1x8xf32>
    %5 = vector.extract_strided_slice %0 {offsets = [1, 0], sizes = [1, 8], strides = [1, 1]} : vector<4x8xf32> to vector<1x8xf32>
    %c0_3 = arith.constant 0 : index
    %c1 = arith.constant 1 : index
    %6 = memref.load %arg2[%c0_3, %c1] : memref<3x4xf32, #tpu.memory_space<smem>>
    %7 = vector.broadcast %6 : f32 to vector<1x8xf32>
    %8 = arith.mulf %5, %7 : vector<1x8xf32>
    %9 = arith.addf %4, %8 : vector<1x8xf32>
    %10 = vector.extract_strided_slice %0 {offsets = [2, 0], sizes = [1, 8], strides = [1, 1]} : vector<4x8xf32> to vector<1x8xf32>
    %c0_4 = arith.constant 0 : index
    %c2 = arith.constant 2 : index
    %11 = memref.load %arg2[%c0_4, %c2] : memref<3x4xf32, #tpu.memory_space<smem>>
    %12 = vector.broadcast %11 : f32 to vector<1x8xf32>
    %13 = arith.mulf %10, %12 : vector<1x8xf32>
    %14 = arith.addf %9, %13 : vector<1x8xf32>
    %15 = vector.extract_strided_slice %0 {offsets = [3, 0], sizes = [1, 8], strides = [1, 1]} : vector<4x8xf32> to vector<1x8xf32>
    %c0_5 = arith.constant 0 : index
    %c3 = arith.constant 3 : index
    %16 = memref.load %arg2[%c0_5, %c3] : memref<3x4xf32, #tpu.memory_space<smem>>
    %17 = vector.broadcast %16 : f32 to vector<1x8xf32>
    %18 = arith.mulf %15, %17 : vector<1x8xf32>
    %19 = arith.addf %14, %18 : vector<1x8xf32>
    %c0_6 = arith.constant 0 : index
    %20 = memref.load %arg3[%c0_6] : memref<3xf32, #tpu.memory_space<smem>>
    %21 = vector.broadcast %20 : f32 to vector<1x8xf32>
    %22 = arith.addf %19, %21 : vector<1x8xf32>
    %23 = vector.extract_strided_slice %0 {offsets = [0, 0], sizes = [1, 8], strides = [1, 1]} : vector<4x8xf32> to vector<1x8xf32>
    %c1_7 = arith.constant 1 : index
    %c0_8 = arith.constant 0 : index
    %24 = memref.load %arg2[%c1_7, %c0_8] : memref<3x4xf32, #tpu.memory_space<smem>>
    %25 = vector.broadcast %24 : f32 to vector<1x8xf32>
    %26 = arith.mulf %23, %25 : vector<1x8xf32>
    %27 = vector.extract_strided_slice %0 {offsets = [1, 0], sizes = [1, 8], strides = [1, 1]} : vector<4x8xf32> to vector<1x8xf32>
    %c1_9 = arith.constant 1 : index
    %c1_10 = arith.constant 1 : index
    %28 = memref.load %arg2[%c1_9, %c1_10] : memref<3x4xf32, #tpu.memory_space<smem>>
    %29 = vector.broadcast %28 : f32 to vector<1x8xf32>
    %30 = arith.mulf %27, %29 : vector<1x8xf32>
    %31 = arith.addf %26, %30 : vector<1x8xf32>
    %32 = vector.extract_strided_slice %0 {offsets = [2, 0], sizes = [1, 8], strides = [1, 1]} : vector<4x8xf32> to vector<1x8xf32>
    %c1_11 = arith.constant 1 : index
    %c2_12 = arith.constant 2 : index
    %33 = memref.load %arg2[%c1_11, %c2_12] : memref<3x4xf32, #tpu.memory_space<smem>>
    %34 = vector.broadcast %33 : f32 to vector<1x8xf32>
    %35 = arith.mulf %32, %34 : vector<1x8xf32>
    %36 = arith.addf %31, %35 : vector<1x8xf32>
    %37 = vector.extract_strided_slice %0 {offsets = [3, 0], sizes = [1, 8], strides = [1, 1]} : vector<4x8xf32> to vector<1x8xf32>
    %c1_13 = arith.constant 1 : index
    %c3_14 = arith.constant 3 : index
    %38 = memref.load %arg2[%c1_13, %c3_14] : memref<3x4xf32, #tpu.memory_space<smem>>
    %39 = vector.broadcast %38 : f32 to vector<1x8xf32>
    %40 = arith.mulf %37, %39 : vector<1x8xf32>
    %41 = arith.addf %36, %40 : vector<1x8xf32>
    %c1_15 = arith.constant 1 : index
    %42 = memref.load %arg3[%c1_15] : memref<3xf32, #tpu.memory_space<smem>>
    %43 = vector.broadcast %42 : f32 to vector<1x8xf32>
    %44 = arith.addf %41, %43 : vector<1x8xf32>
    %45 = vector.extract_strided_slice %0 {offsets = [0, 0], sizes = [1, 8], strides = [1, 1]} : vector<4x8xf32> to vector<1x8xf32>
    %c2_16 = arith.constant 2 : index
    %c0_17 = arith.constant 0 : index
    %46 = memref.load %arg2[%c2_16, %c0_17] : memref<3x4xf32, #tpu.memory_space<smem>>
    %47 = vector.broadcast %46 : f32 to vector<1x8xf32>
    %48 = arith.mulf %45, %47 : vector<1x8xf32>
    %49 = vector.extract_strided_slice %0 {offsets = [1, 0], sizes = [1, 8], strides = [1, 1]} : vector<4x8xf32> to vector<1x8xf32>
    %c2_18 = arith.constant 2 : index
    %c1_19 = arith.constant 1 : index
    %50 = memref.load %arg2[%c2_18, %c1_19] : memref<3x4xf32, #tpu.memory_space<smem>>
    %51 = vector.broadcast %50 : f32 to vector<1x8xf32>
    %52 = arith.mulf %49, %51 : vector<1x8xf32>
    %53 = arith.addf %48, %52 : vector<1x8xf32>
    %54 = vector.extract_strided_slice %0 {offsets = [2, 0], sizes = [1, 8], strides = [1, 1]} : vector<4x8xf32> to vector<1x8xf32>
    %c2_20 = arith.constant 2 : index
    %c2_21 = arith.constant 2 : index
    %55 = memref.load %arg2[%c2_20, %c2_21] : memref<3x4xf32, #tpu.memory_space<smem>>
    %56 = vector.broadcast %55 : f32 to vector<1x8xf32>
    %57 = arith.mulf %54, %56 : vector<1x8xf32>
    %58 = arith.addf %53, %57 : vector<1x8xf32>
    %59 = vector.extract_strided_slice %0 {offsets = [3, 0], sizes = [1, 8], strides = [1, 1]} : vector<4x8xf32> to vector<1x8xf32>
    %c2_22 = arith.constant 2 : index
    %c3_23 = arith.constant 3 : index
    %60 = memref.load %arg2[%c2_22, %c3_23] : memref<3x4xf32, #tpu.memory_space<smem>>
    %61 = vector.broadcast %60 : f32 to vector<1x8xf32>
    %62 = arith.mulf %59, %61 : vector<1x8xf32>
    %63 = arith.addf %58, %62 : vector<1x8xf32>
    %c2_24 = arith.constant 2 : index
    %64 = memref.load %arg3[%c2_24] : memref<3xf32, #tpu.memory_space<smem>>
    %65 = vector.broadcast %64 : f32 to vector<1x8xf32>
    %66 = arith.addf %63, %65 : vector<1x8xf32>
    %67 = arith.maximumf %22, %44 : vector<1x8xf32>
    %68 = arith.maximumf %67, %66 : vector<1x8xf32>
    %69 = arith.subf %22, %68 : vector<1x8xf32>
    %70 = math.exp %69 : vector<1x8xf32>
    %71 = arith.subf %44, %68 : vector<1x8xf32>
    %72 = math.exp %71 : vector<1x8xf32>
    %73 = arith.subf %66, %68 : vector<1x8xf32>
    %74 = math.exp %73 : vector<1x8xf32>
    %75 = arith.addf %70, %72 : vector<1x8xf32>
    %76 = arith.addf %75, %74 : vector<1x8xf32>
    %77 = tpu.reciprocal %76 : vector<1x8xf32> -> vector<1x8xf32>
    %78 = arith.mulf %70, %77 : vector<1x8xf32>
    %c0_25 = arith.constant 0 : index
    %c0_26 = arith.constant 0 : index
    %79 = vector.load %arg4[%c0_25, %c0_26] : memref<3x8xf32, #tpu.memory_space<vmem>>, vector<1x8xf32>
    tpu.vector_store %arg4[%c0_25, %c0_26], %78 {strides = array<i32>} : memref<3x8xf32, #tpu.memory_space<vmem>>, vector<1x8xf32>,
    %80 = arith.mulf %72, %77 : vector<1x8xf32>
    %c1_27 = arith.constant 1 : index
    %c0_28 = arith.constant 0 : index
    %81 = vector.load %arg4[%c1_27, %c0_28] : memref<3x8xf32, #tpu.memory_space<vmem>>, vector<1x8xf32>
    tpu.vector_store %arg4[%c1_27, %c0_28], %80 {strides = array<i32>} : memref<3x8xf32, #tpu.memory_space<vmem>>, vector<1x8xf32>,
    %82 = arith.mulf %74, %77 : vector<1x8xf32>
    %c2_29 = arith.constant 2 : index
    %c0_30 = arith.constant 0 : index
    %83 = vector.load %arg4[%c2_29, %c0_30] : memref<3x8xf32, #tpu.memory_space<vmem>>, vector<1x8xf32>
    tpu.vector_store %arg4[%c2_29, %c0_30], %82 {strides = array<i32>} : memref<3x8xf32, #tpu.memory_space<vmem>>, vector<1x8xf32>,
    return
  }
  func.func @transform_0(%arg0: i32) -> (i32, i32) {
    %c0_i32 = arith.constant 0 : i32
    %c0_i32_0 = arith.constant 0 : i32
    return %c0_i32, %arg0 : i32, i32
  }
  func.func @transform_1(%arg0: i32) -> (i32, i32) {
    %c0_i32 = arith.constant 0 : i32
    %c0_i32_0 = arith.constant 0 : i32
    %c0_i32_1 = arith.constant 0 : i32
    return %c0_i32, %c0_i32_0 : i32, i32
  }
  func.func @transform_2(%arg0: i32) -> i32 {
    %c0_i32 = arith.constant 0 : i32
    %c0_i32_0 = arith.constant 0 : i32
    return %c0_i32 : i32
  }
  func.func @transform_3(%arg0: i32) -> (i32, i32) {
    %c0_i32 = arith.constant 0 : i32
    %c0_i32_0 = arith.constant 0 : i32
    return %c0_i32, %arg0 : i32, i32
  }
}

</mosaic_0001>

<bundles_post_ra>
// kernel: tpu_custom_call.1
= control target key start
LH: loop header
LB: loop body
LE: loop exit
PB: predicated region body
PF: predicated region fallthrough
CT: control target
= control target key end

     0   :  { %8 = vsyncpa [#allocation3], 0  ;;  %s305_s0 = inlined_call_operand.hbm [shape: f32[4,8], index: 0, kind: input, shape index: {}]   ;;  %s306_s1 = inlined_call_operand.hbm [shape: f32[3,4], index: 1, kind: input, shape index: {}]   ;;  %s307_s2 = inlined_call_operand.vmem [shape: f32[3], index: 2, kind: input, shape index: {}]   ;;  %s308_s3 = inlined_call_operand.hbm [shape: f32[3,8], index: 3, kind: output, shape index: {}]  }
   0x1   :  { %9 = vsyncpa [#allocation5], 0 }
   0x2   :  { %10 = vsyncpa [#allocation6], 0 }
   0x3   :  { %11 = vsyncpa [#allocation4], 0  ;;  %s263_s12 = smov [#allocation2]   ;;  %s36_s16 = sshll.u32 %s307_s2, 4  ;;  %s37_s16 = int_to_ptr.vmem [resolvable:$true] %s36_s16 }
   0x4   :  { %s18_s13 = sshll.u32 %s263_s12, 4  ;;  %s19_s13 = int_to_ptr.vmem [resolvable:$true] %s18_s13 }
   0x5   :  { %s203_s17 = scalar_lea.vmem %s19_s13, 64  ;;  %p208_p1 = scmp.lt.s32.totalorder %s19_s13, %s19_s13 }
   0x6   :  { %p204_p0 = scmp.ne.s32.totalorder %s19_s13, %s203_s17  ;;  %p209_p2 = scmp.lt.s32.totalorder %s203_s17, %s203_s17 }
   0x8   :  { %p210_p3 = por %p209_p2, %p208_p1 }
   0xa   :  { %p211_p4 = pnand %p210_p3, %p204_p0 }
   0xc   :  { %214 = shalt.err (!%p211_p4)
}
   0xd   :  { %21 = dma.hbm_to_vmem [thread:$0]  %s305_s0, 64, %s19_s13, [#allocation3]  }
   0xe   :  { %s264_s20 = smov [#allocation7]   ;;  %s223_s23 = scalar_lea.vmem %s37_s16, 16 }
   0xf   :  { %29 = dma.hbm_to_smem %s306_s1, 64, %s264_s20, [#allocation5]  }
  0x10   :  { %p224_p5 = scmp.ne.s32.totalorder %s37_s16, %s223_s23  ;;  %p228_p6 = scmp.lt.s32.totalorder %s37_s16, %s37_s16 }
  0x11   :  { %p229_p7 = scmp.lt.s32.totalorder %s223_s23, %s223_s23 }
  0x13   :  { %p230_p8 = por %p229_p7, %p228_p6 }
  0x15   :  { %p231_p9 = pnand %p230_p8, %p224_p5 }
  0x17   :  { %234 = shalt.err (!%p231_p9)
}
  0x18   :  { %s265_s2 = smov [#allocation8]  }
  0x19   :  { %39 = dma.vmem_to_smem %s37_s16, 16, %s265_s2, [#allocation6]  }
  0x1a   :  { %255 = dma.done.wait [#allocation3], 64  }
  0x1b   :  { %256 = vsyncadd [#allocation3], 4294967232 }
  0x1c   :  { %257 = dma.done.wait [#allocation5], 64  }
  0x1d   :  { %258 = vsyncadd [#allocation5], 4294967232 }
  0x1e   :  { %259 = dma.done.wait [#allocation6], 16  }
  0x1f   :  { %260 = vsyncadd [#allocation6], 4294967280 }
  0x20   :  { %49 = sfence }
  0x21   :  { %s51_s0 = sld [smem:[#allocation7]]  ;;  %v50_v0 = vld [vmem:[#allocation2] sm:$0xf]  ;;  %s266_s10 = smov [#allocation9]   ;;  %vm147_vm0 = vcmask 57344  }
  0x22   :  { %s170_s24 = sld [smem:[#allocation7 + $0x1]]  ;;  %s159_s11 = sshll.u32 %s266_s10, 4  ;;  %s160_s11 = int_to_ptr.vmem [resolvable:$true] %s159_s11 }
  0x23   :  { %s171_s25 = sld [smem:[#allocation7 + $0x2]]  ;;  %s235_s12 = scalar_lea.vmem %s160_s11, 64 }
  0x24   :  { %s172_s1 = sld [smem:[#allocation7 + $0x3]]  ;;  %p236_p10 = scmp.ne.s32.totalorder %s160_s11, %s235_s12 }
  0x25   :  { %s296_s26 = sld [smem:[#allocation8]]  ;;  %p240_p11 = scmp.lt.s32.totalorder %s160_s11, %s160_s11 }
  0x26   :  { %s173_s27 = sld [smem:[#allocation7 + $0x80]]  ;;  %p241_p12 = scmp.lt.s32.totalorder %s235_s12, %s235_s12 }
  0x27   :  { %v52_v1 = vstv %s51_s0  ;;  %s174_s28 = sld [smem:[#allocation7 + $0x81]] }
  0x28   :  { %v55_v2 = vstv %s170_s24  ;;  %s175_s29 = sld [smem:[#allocation7 + $0x82]]  ;;  %v53_v3 = vmul.f32 %v52_v1, %v50_v0  ;;  %p242_p13 = por %p241_p12, %p240_p11 }
  0x29   :  { %v56_v4 = vmul.f32 %v55_v2, %v50_v0  ;;  %v62_v5 = vstv %s171_s25  ;;  %s176_s30 = sld [smem:[#allocation7 + $0x83]] }
  0x2a   :  { %v63_v6 = vmul.f32 %v62_v5, %v50_v0  ;;  %v69_v7 = vstv %s172_s1  ;;  %s298_s4 = sld [smem:[#allocation8 + $0x1]]  ;;  %p243_p0 = pnand %p242_p13, %p236_p10 }
  0x2b   :  { %v58_v8 = vrot.slane %v56_v4, 1  ;;  %v70_v9 = vmul.f32 %v69_v7, %v50_v0  ;;  %s178_s5 = sld [smem:[#allocation7 + $0x100]]  ;;  %v76_v32 = vstv %s296_s26 }
  0x2c   :  { %v65_v10 = vrot.slane %v63_v6, 2  ;;  %v79_v11 = vstv %s173_s27  ;;  %s179_s6 = sld [smem:[#allocation7 + $0x101]] }
  0x2d   :  { %v60_v12 = vadd.f32 %v58_v8, %v53_v3  ;;  %v82_v13 = vstv %s174_s28  ;;  %s180_s7 = sld [smem:[#allocation7 + $0x102]]  ;;  %v80_v14 = vmul.f32 %v79_v11, %v50_v0  ;;  %v72_v18 = vrot.slane %v70_v9, 3 }
  0x2e   :  { %v83_v15 = vmul.f32 %v82_v13, %v50_v0  ;;  %v89_v16 = vstv %s175_s29  ;;  %s181_s8 = sld [smem:[#allocation7 + $0x103]] }
  0x2f   :  { %v67_v17 = vadd.f32 %v65_v10, %v60_v12  ;;  %v90_v19 = vmul.f32 %v89_v16, %v50_v0  ;;  %v96_v20 = vstv %s176_s30  ;;  %s182_s9 = sld [smem:[#allocation8 + $0x2]] }
  0x30   :  { %v85_v21 = vrot.slane %v83_v15, 1  ;;  %v97_v22 = vmul.f32 %v96_v20, %v50_v0  ;;  %v103_v36 = vstv %s298_s4 }
  0x31   :  { %v92_v23 = vrot.slane %v90_v19, 2  ;;  %v106_v24 = vstv %s178_s5  ;;  %v74_v28 = vadd.f32 %v72_v18, %v67_v17 }
  0x32   :  { %v87_v25 = vadd.f32 %v85_v21, %v80_v14  ;;  %v99_v26 = vrot.slane %v97_v22, 3  ;;  %v109_v27 = vstv %s179_s6  ;;  %v107_v29 = vmul.f32 %v106_v24, %v50_v0 }
  0x33   :  { %v110_v30 = vmul.f32 %v109_v27, %v50_v0  ;;  %v116_v31 = vstv %s180_s7  ;;  %v77_v41 = vadd.f32 %v76_v32, %v74_v28 }
  0x34   :  { %v94_v33 = vadd.f32 %v92_v23, %v87_v25  ;;  %v117_v34 = vmul.f32 %v116_v31, %v50_v0  ;;  %v123_v35 = vstv %s181_s8 }
  0x35   :  { %v112_v37 = vrot.slane %v110_v30, 1  ;;  %v124_v38 = vmul.f32 %v123_v35, %v50_v0  ;;  %v130_v46 = vstv %s182_s9 }
  0x36   :  { %v101_v39 = vadd.f32 %v99_v26, %v94_v33  ;;  %v119_v40 = vrot.slane %v117_v34, 2 }
  0x37   :  { %v114_v42 = vadd.f32 %v112_v37, %v107_v29  ;;  %v126_v43 = vrot.slane %v124_v38, 3 }
  0x38   :  { %v104_v44 = vadd.f32 %v103_v36, %v101_v39 }
  0x39   :  { %v121_v45 = vadd.f32 %v119_v40, %v114_v42 }
  0x3a   :  { %v132_v48 = vmax.f32 %v77_v41, %v104_v44 }
  0x3b   :  { %v128_v47 = vadd.f32 %v126_v43, %v121_v45 }
  0x3d   :  { %v131_v49 = vadd.f32 %v130_v46, %v128_v47 }
  0x3f   :  { %v133_v50 = vmax.f32 %v132_v48, %v131_v49 }
  0x41   :  { %v134_v51 = vsub.f32 %v77_v41, %v133_v50  ;;  %v137_v52 = vsub.f32 %v104_v44, %v133_v50  ;;  %v140_v53 = vsub.f32 %v131_v49, %v133_v50 }
  0x43   :  { %v135_v54 = vmul.f32 1.442695, %v134_v51  ;;  %v138_v55 = vmul.f32 1.442695, %v137_v52  ;;  %v141_v56 = vmul.f32 1.442695, %v140_v53 }
  0x45   :  { %187 = vpow2.f32 %v135_v54 }
  0x46   :  { %189 = vpow2.f32 %v138_v55 }
  0x47   :  { %191 = vpow2.f32 %v141_v56 }
  0x52   :  { %v188_v57 = vpop.eup %187 }
  0x53   :  { %v190_v58 = vpop.eup %189 }
  0x54   :  { %v192_v59 = vpop.eup %191  ;;  %v143_v60 = vadd.f32 %v190_v58, %v188_v57 }
  0x56   :  { %v144_v61 = vadd.f32 %v192_v59, %v143_v60 }
  0x58   :  { %193 = vrcp.f32 %v144_v61 }
  0x65   :  { %v194_v62 = vpop.eup %193 }
  0x66   :  { %v146_v63 = vmul.f32 %v194_v62, %v188_v57  ;;  %v149_v0 = vmul.f32 %v194_v62, %v190_v58  ;;  %v151_v1 = vmul.f32 %v194_v62, %v192_v59 }
  0x68   :  { %148 = vst.msk [vmem:[#allocation9] sm:$0x1] %vm147_vm0, %v146_v63  ;;  %150 = vst.msk [vmem:[#allocation9 + $0x1] sm:$0x1] %vm147_vm0, %v149_v0 }
  0x69   :  { %152 = vst.msk [vmem:[#allocation9 + $0x2] sm:$0x1] %vm147_vm0, %v151_v1 }
  0x6a   :  { %246 = shalt.err (!%p243_p0)
}
  0x6b   :  { %162 = dma.vmem_to_hbm [thread:$0]  %s160_s11, 64, %s308_s3, [#allocation4]  }
  0x6c   :  { %261 = dma.done.wait [#allocation4], 64  }
  0x6d   :  { %262 = vsyncadd [#allocation4], 4294967232 }
  0x6e   :  { %166 = vsyncpa [#allocation3], 1 }
  0x6f   :  { %167 = vsyncpa [#allocation4], 1 }
  0x70   :  { %168 = vsyncpa [#allocation5], 1 }
  0x71   :  { %169 = vsyncpa [#allocation6], 1 }

</bundles_post_ra>
